<compile_context>
chip_gen: v7x
topology: tpu7x:2x2x1
jax: 0.10.0
libtpu: 0.0.40
codegen_flags: <defaults>
</compile_context>

<pallas_src>
import functools

import numpy as np
import jax
import jax.numpy as jnp
from jax.experimental import pallas as pl
from jax.experimental.pallas import tpu as pltpu


# ----------------------------------------------------------------------------
# Pallas kernel: fused GEMM chain  (dot -> ReLU -> dot -> ReLU -> dot -> Tanh)
# ----------------------------------------------------------------------------
def _fused_generator_kernel(z_ref, *refs, num_layers):
    t_refs = refs[:num_layers]
    o_ref = refs[num_layers]
    compute_dtype = z_ref.dtype           # bf16 on the perf path, f32 on check path
    h = z_ref[...]
    for li in range(num_layers):
        # MXU: low-precision operands, f32 accumulation.
        acc = jnp.dot(h, t_refs[li][...], preferred_element_type=jnp.float32)
        if li < num_layers - 1:
            # ReLU on the f32 accumulator, then re-narrow only the MXU operand.
            h = jnp.maximum(acc, 0.0).astype(compute_dtype)
        else:
            # Tanh stays in f32 (EUP); narrowed only at the final store.
            h = jnp.tanh(acc)
    o_ref[...] = h.astype(o_ref.dtype)


def _round_up(x, m):
    return ((x + m - 1) // m) * m


def _assert_fits_vmem(transforms, block_b, n_out, compute_dtype, out_dtype,
                      budget_bytes=24 * 1024 * 1024):
    """Guard the dense-fold path: everything must comfortably fit one core's VMEM."""
    c_item = np.dtype(compute_dtype).itemsize
    o_item = np.dtype(out_dtype).itemsize
    nz = transforms[0].shape[0]
    w_bytes = 2 * sum(int(np.prod(t.shape)) * c_item for t in transforms)   # double-buffered
    io_bytes = 2 * block_b * (nz * c_item + n_out * o_item)                 # z + out blocks
    act_bytes = block_b * sum(int(t.shape[1]) for t in transforms) * 4      # f32 intermediates
    total = w_bytes + io_bytes + act_bytes
    if total > budget_bytes:
        # TODO(synk): add a tiled ConvTranspose / blocked-GEMM fallback for larger
        # isize/ngf configs where the dense-folded transforms exceed VMEM.
        raise ValueError(
            f"dense-folded DCGAN_G_nobn path needs ~{total/2**20:.1f} MiB VMEM "
            f"(> {budget_bytes/2**20:.0f} MiB budget); only valid for small isize/ngf."
        )


def fused_generator(z_flat, transforms, *, out_dtype=jnp.bfloat16,
                    latency_block_b=256, max_block_b=1024):
    """z_flat: (B, nz).  transforms: list of dense per-layer (K_l, N_l) matrices
    (their dtype sets the MXU operand dtype — bf16 recommended).

    Returns (B, nc*isize*isize) flattened in (c, h, w) order (i.e. NCHW-ready).
    """
    compute_dtype = transforms[0].dtype
    z_flat = z_flat.astype(compute_dtype)
    B, nz = z_flat.shape
    n_out = transforms[-1].shape[1]
    num_layers = len(transforms)
    kernel = functools.partial(_fused_generator_kernel, num_layers=num_layers)

    if B <= latency_block_b:
        # Tiny-batch / latency path: one invocation, every operand is a single
        # full-array VMEM block (no grid, no pipeline machinery).
        _assert_fits_vmem(transforms, B, n_out, compute_dtype, out_dtype)
        return pl.pallas_call(
            kernel,
            out_shape=jax.ShapeDtypeStruct((B, n_out), out_dtype),
            in_specs=[pl.BlockSpec(memory_space=pltpu.MemorySpace.VMEM)]
            * (1 + num_layers),
            out_specs=pl.BlockSpec(memory_space=pltpu.MemorySpace.VMEM),
        )(z_flat, *transforms)

    # Large-batch path: tile the batch (M) axis with big blocks (per-step
    # pipeline overhead dominates small tiles), but keep >= 2 grid steps so the
    # "parallel" batch axis can be sharded across v7x's two TensorCores.
    block_b = min(max_block_b, _round_up(pl.cdiv(B, 2), 128))
    _assert_fits_vmem(transforms, block_b, n_out, compute_dtype, out_dtype)
    bp = block_b * pl.cdiv(B, block_b)
    if bp != B:
        z_flat = jnp.pad(z_flat, ((0, bp - B), (0, 0)))
    in_specs = [pl.BlockSpec((block_b, nz), lambda i: (i, 0))]
    # Weight matrices: constant index_map -> DMA'd once and kept resident.
    # (pl.Buffered(1) would reclaim the ~0.5 MiB default double-buffer copy,
    #  but VMEM headroom is ample at block_b <= 1024, so keep the default.)
    in_specs += [pl.BlockSpec(t.shape, lambda i: (0, 0)) for t in transforms]
    out = pl.pallas_call(
        kernel,
        out_shape=jax.ShapeDtypeStruct((bp, n_out), out_dtype),
        grid=(bp // block_b,),
        in_specs=in_specs,
        out_specs=pl.BlockSpec((block_b, n_out), lambda i: (i, 0)),
        compiler_params=pltpu.CompilerParams(
            dimension_semantics=("parallel",),
            vmem_limit_bytes=32 * 1024 * 1024,   # > v5e's 16 MiB scoped default,
        ),                                        # < every chip's physical VMEM
    )(z_flat, *transforms)
    return out[:B]


# ----------------------------------------------------------------------------
# One-time weight preprocessing: fold each ConvTranspose2d into a dense matrix
# ----------------------------------------------------------------------------
def convt_as_matrix(w, h_in, w_in, stride, pad):
    """ConvTranspose2d(bias=False), weight w (Cin, Cout, k, k), acting on a
    (Cin, h_in, w_in) input, folded into T of shape (Cin*h_in*w_in, Cout*h_out*w_out):

      out_flat[(co,oh,ow)] = sum_{ci,ih,iw} x_flat[(ci,ih,iw)] * T[(ci,ih,iw),(co,oh,ow)]
      T[...] = w[ci, co, oh + pad - ih*stride, ow + pad - iw*stride] if in range else 0

    which is exactly PyTorch ConvTranspose2d semantics.
    """
    c_in, c_out, k, _ = w.shape
    h_out = (h_in - 1) * stride - 2 * pad + k
    w_out = (w_in - 1) * stride - 2 * pad + k

    kh = jnp.arange(h_out)[None, :] + pad - jnp.arange(h_in)[:, None] * stride  # (h_in, h_out)
    kw = jnp.arange(w_out)[None, :] + pad - jnp.arange(w_in)[:, None] * stride  # (w_in, w_out)
    vh = (kh >= 0) & (kh < k)
    vw = (kw >= 0) & (kw < k)

    t = w[:, :, jnp.clip(kh, 0, k - 1), :]          # (Cin, Cout, h_in, h_out, k)
    t = t[:, :, :, :, jnp.clip(kw, 0, k - 1)]       # (Cin, Cout, h_in, h_out, w_in, w_out)
    mask = vh[:, :, None, None] & vw[None, None, :, :]
    t = t * mask[None, None].astype(t.dtype)
    t = jnp.transpose(t, (0, 2, 4, 1, 3, 5))        # (Cin, h_in, w_in, Cout, h_out, w_out)
    return t.reshape(c_in * h_in * w_in, c_out * h_out * w_out), h_out, w_out


def prepare_transforms(params):
    mats = []
    h = w = 1
    t, h, w = convt_as_matrix(params["initial"], h, w, stride=1, pad=0)
    mats.append(t)
    for wt in params["pyramid"]:
        t, h, w = convt_as_matrix(wt, h, w, stride=2, pad=1)
        mats.append(t)
    t, h, w = convt_as_matrix(params["final"], h, w, stride=2, pad=1)
    mats.append(t)
    return mats


# ----------------------------------------------------------------------------
# Model: parameter construction mirrors DCGAN_G_nobn.__init__
# ----------------------------------------------------------------------------
def init_params(key, isize, nz, nc, ngf):
    assert isize % 16 == 0, "isize has to be a multiple of 16"
    cngf, tisize = ngf // 2, 4
    while tisize != isize:
        cngf, tisize = cngf * 2, tisize * 2

    def w(k, shape):  # deterministic DCGAN-style init
        return 0.02 * jax.random.normal(k, shape, jnp.float32)

    keys = iter(jax.random.split(key, 8))
    params = {"initial": w(next(keys), (nz, cngf, 4, 4)), "pyramid": []}
    csize, c = 4, cngf
    while csize < isize // 2:
        params["pyramid"].append(w(next(keys), (c, c // 2, 4, 4)))
        c, csize = c // 2, csize * 2
    # TODO(synk): n_extra_layers > 0 (Conv2d 3x3 + ReLU blocks) not implemented;
    # the module default used here is n_extra_layers=0.
    params["final"] = w(next(keys), (c, nc, 4, 4))
    return params


def dcgan_g_nobn_forward(z, transforms, nc, isize, out_dtype=jnp.bfloat16):
    B = z.shape[0]
    out_flat = fused_generator(z.reshape(B, -1), transforms, out_dtype=out_dtype)
    return out_flat.reshape(B, nc, isize, isize)   # flat order is (c, h, w) -> NCHW


# ----------------------------------------------------------------------------
# References for checking
# ----------------------------------------------------------------------------
def convt_ref(x, w, stride, pad):
    """Scatter-form ConvTranspose2d (pure JAX), for the exact f32 check."""
    B, Cin, H, W = x.shape
    _, Cout, k, _ = w.shape
    Hf, Wf = (H - 1) * stride + k, (W - 1) * stride + k
    out = jnp.zeros((B, Cout, Hf, Wf), jnp.float32)
    for ih in range(H):
        for iw in range(W):
            contrib = jnp.einsum("bc,cokl->bokl", x[:, :, ih, iw], w)
            out = out.at[:, :, ih * stride:ih * stride + k,
                         iw * stride:iw * stride + k].add(contrib)
    return out[:, :, pad:Hf - pad, pad:Wf - pad]


def bf16_gemm_ref(z_flat_f32, transforms_f32):
    """Numpy emulation of the bf16 kernel path (bf16-rounded MXU operands,
    f32 accumulation & elementwise math, bf16 output)."""
    def rb(x):  # round-trip through bfloat16
        return np.asarray(jnp.asarray(x, jnp.float32).astype(jnp.bfloat16)
                          .astype(jnp.float32))
    h = rb(z_flat_f32)
    n = len(transforms_f32)
    for li, t in enumerate(transforms_f32):
        h = h @ rb(t)
        if li < n - 1:
            h = rb(np.maximum(h, 0.0))
        else:
            h = np.tanh(h)
    return rb(h)


if __name__ == "__main__":
    isize, nz, nc, ngf, batch = 16, 8, 3, 4, 2
    key = jax.random.PRNGKey(0)
    kz, kb, kp = jax.random.split(key, 3)
    params = init_params(kp, isize, nz, nc, ngf)

    transforms_f32 = prepare_transforms(params)                         # exact-check path
    transforms_bf16 = [t.astype(jnp.bfloat16) for t in transforms_f32]  # one-time perf cast

    fwd_f32 = jax.jit(functools.partial(dcgan_g_nobn_forward, nc=nc, isize=isize,
                                        out_dtype=jnp.float32))
    fwd_bf16 = jax.jit(functools.partial(dcgan_g_nobn_forward, nc=nc, isize=isize,
                                         out_dtype=jnp.bfloat16))

    z = jax.random.normal(kz, (batch, nz, 1, 1), jnp.float32)

    # --- exact f32 path vs scatter-form ConvTranspose2d reference ------------
    out_f32 = jax.block_until_ready(fwd_f32(z, transforms_f32))
    assert out_f32.shape == (batch, nc, isize, isize), out_f32.shape
    ref = jnp.maximum(convt_ref(z, params["initial"], 1, 0), 0.0)
    for w in params["pyramid"]:
        ref = jnp.maximum(convt_ref(ref, w, 2, 1), 0.0)
    ref = jnp.tanh(convt_ref(ref, params["final"], 2, 1))
    np.testing.assert_allclose(np.asarray(out_f32), np.asarray(ref), rtol=1e-4, atol=1e-4)

    # --- bf16 perf path, small batch (latency branch) ------------------------
    out_bf = jax.block_until_ready(fwd_bf16(z, transforms_bf16))
    ref_bf = bf16_gemm_ref(np.asarray(z.reshape(batch, -1), np.float32), transforms_f32)
    np.testing.assert_allclose(
        np.asarray(out_bf.astype(jnp.float32)).reshape(batch, -1),
        ref_bf, rtol=2e-2, atol=1e-5)

    # --- bf16 perf path, large batch (tiled, megacore-parallel branch) -------
    big_b = 4096
    zb = jax.random.normal(kb, (big_b, nz, 1, 1), jnp.float32)
    outb = jax.block_until_ready(fwd_bf16(zb, transforms_bf16))
    refb = bf16_gemm_ref(np.asarray(zb.reshape(big_b, -1), np.float32), transforms_f32)
    np.testing.assert_allclose(
        np.asarray(outb.astype(jnp.float32)).reshape(big_b, -1),
        refb, rtol=2e-2, atol=1e-5)

    print("KERNEL_OK")
</pallas_src>

<mosaic_0001>
module attributes {stable_mosaic.version = 11 : i64} {
  func.func @_fused_generator_kernel(%arg0: memref<2x8xf32, #tpu.memory_space<vmem>>, %arg1: memref<8x128xf32, #tpu.memory_space<vmem>>, %arg2: memref<128x256xf32, #tpu.memory_space<vmem>>, %arg3: memref<256x768xf32, #tpu.memory_space<vmem>>, %arg4: memref<2x768xf32, #tpu.memory_space<vmem>>) attributes {dimension_semantics = [], scalar_prefetch = 0 : i64, scratch_operands = 0 : i64, tpu.core_type = #tpu.core_type<tc>} {
    %c0 = arith.constant 0 : index
    %c0_0 = arith.constant 0 : index
    %0 = vector.load %arg0[%c0, %c0_0] : memref<2x8xf32, #tpu.memory_space<vmem>>, vector<2x8xf32>
    %c0_1 = arith.constant 0 : index
    %c0_2 = arith.constant 0 : index
    %1 = vector.load %arg1[%c0_1, %c0_2] : memref<8x128xf32, #tpu.memory_space<vmem>>, vector<8x128xf32>
    %cst = arith.constant dense<0.000000e+00> : vector<2x128xf32>
    %2 = tpu.matmul %0, %1, %cst {dimension_numbers = #tpu.dot_dimension_numbers<[1], [0], [0], [1], [0, 0, 1, 1], [], []>} : vector<2x8xf32>, vector<8x128xf32>, vector<2x128xf32> -> vector<2x128xf32>
    %cst_3 = arith.constant 0.000000e+00 : f32
    %3 = vector.broadcast %cst_3 : f32 to vector<2x128xf32>
    %4 = arith.maximumf %2, %3 : vector<2x128xf32>
    %c0_4 = arith.constant 0 : index
    %c0_5 = arith.constant 0 : index
    %5 = vector.load %arg2[%c0_4, %c0_5] : memref<128x256xf32, #tpu.memory_space<vmem>>, vector<128x256xf32>
    %cst_6 = arith.constant dense<0.000000e+00> : vector<2x256xf32>
    %6 = tpu.matmul %4, %5, %cst_6 {dimension_numbers = #tpu.dot_dimension_numbers<[1], [0], [0], [1], [0, 0, 1, 1], [], []>} : vector<2x128xf32>, vector<128x256xf32>, vector<2x256xf32> -> vector<2x256xf32>
    %cst_7 = arith.constant 0.000000e+00 : f32
    %7 = vector.broadcast %cst_7 : f32 to vector<2x256xf32>
    %8 = arith.maximumf %6, %7 : vector<2x256xf32>
    %c0_8 = arith.constant 0 : index
    %c0_9 = arith.constant 0 : index
    %9 = vector.load %arg3[%c0_8, %c0_9] : memref<256x768xf32, #tpu.memory_space<vmem>>, vector<256x768xf32>
    %cst_10 = arith.constant dense<0.000000e+00> : vector<2x768xf32>
    %10 = tpu.matmul %8, %9, %cst_10 {dimension_numbers = #tpu.dot_dimension_numbers<[1], [0], [0], [1], [0, 0, 1, 1], [], []>} : vector<2x256xf32>, vector<256x768xf32>, vector<2x768xf32> -> vector<2x768xf32>
    %11 = math.tanh %10 : vector<2x768xf32>
    %c0_11 = arith.constant 0 : index
    %c0_12 = arith.constant 0 : index
    %12 = vector.load %arg4[%c0_11, %c0_12] : memref<2x768xf32, #tpu.memory_space<vmem>>, vector<2x768xf32>
    tpu.vector_store %arg4[%c0_11, %c0_12], %11 {strides = array<i32>} : memref<2x768xf32, #tpu.memory_space<vmem>>, vector<2x768xf32>,
    return
  }
}

</mosaic_0001>

<bundles_post_ra>
// kernel: dcgan_g_nobn_forward.1
= control target key start
LH: loop header
LB: loop body
LE: loop exit
PB: predicated region body
PF: predicated region fallthrough
CT: control target
= control target key end

     0   :  { %9 = vsyncpa [#allocation3], 0  ;;  %s1100_s0 = inlined_call_operand.vmem [shape: f32[2,8], index: 0, kind: input, shape index: {}]   ;;  %s1101_s1 = inlined_call_operand.hbm [shape: f32[8,128], index: 1, kind: input, shape index: {}]   ;;  %s1102_s2 = inlined_call_operand.hbm [shape: f32[128,256], index: 2, kind: input, shape index: {}]   ;;  %s1103_s3 = inlined_call_operand.hbm [shape: f32[256,768], index: 3, kind: input, shape index: {}]   ;;  %s1104_s4 = inlined_call_operand.vmem [shape: f32[2,768], index: 4, kind: output, shape index: {}]  }
   0x1   :  { %10 = vsyncpa [#allocation5], 0  ;;  %s1015_s15 = smov [#allocation4]   ;;  %s945_s19 = scalar_lea.hbm %s1102_s2, 4096 }
   0x2   :  { %s28_s16 = sshll.u32 %s1015_s15, 4  ;;  %p946_p0 = scmp.ne.s32.totalorder %s1102_s2, %s945_s19  ;;  %s29_s16 = int_to_ptr.vmem [resolvable:$true] %s28_s16 }
   0x3   :  { %p949_p1 = scmp.lt.u32.totalorder %s945_s19, %s1102_s2 }
   0x5   :  { %p951_p2 = pnand %p949_p1, %p946_p0 }
   0x7   :  { %954 = shalt.err (!%p951_p2)
}
   0x8   :  { %s955_s24 = scalar_lea.vmem %s29_s16, 4096  ;;  %p960_p4 = scmp.lt.s32.totalorder %s29_s16, %s29_s16 }
   0x9   :  { %p956_p3 = scmp.ne.s32.totalorder %s29_s16, %s955_s24  ;;  %p961_p5 = scmp.lt.s32.totalorder %s955_s24, %s955_s24 }
   0xb   :  { %p962_p6 = por %p961_p5, %p960_p4 }
   0xd   :  { %p963_p7 = pnand %p962_p6, %p956_p3 }
   0xf   :  { %966 = shalt.err (!%p963_p7)
}
  0x10   :  { %s1016_s25 = smov 256   ;;  %s1017_s26 = smov 16  }
  0x11   :  { %34 = dma.hbm_to_vmem [thread:$0]  %s1102_s2, 4096, %s29_s16, [#allocation5], %s1016_s25, %s1016_s25, %s1017_s26  }
  0x12   :  { %s1018_s29 = smov [#allocation2]   ;;  %s1019_s5 = smov [#allocation6]  }
  0x13   :  { %s19_s30 = sshll.u32 %s1018_s29, 4  ;;  %s40_s6 = sshll.u32 %s1019_s5, 4  ;;  %s20_s30 = int_to_ptr.vmem [resolvable:$true] %s19_s30  ;;  %s41_s6 = int_to_ptr.vmem [resolvable:$true] %s40_s6 }
  0x14   :  { %s967_s9 = scalar_lea.hbm %s1101_s1, 128 }
  0x15   :  { %p968_p8 = scmp.ne.s32.totalorder %s1101_s1, %s967_s9  ;;  %p971_p9 = scmp.lt.u32.totalorder %s967_s9, %s1101_s1 }
  0x17   :  { %p973_p10 = pnand %p971_p9, %p968_p8 }
  0x19   :  { %976 = shalt.err (!%p973_p10)
}
  0x1a   :  { %s977_s2 = scalar_lea.vmem %s20_s30, 128  ;;  %p982_p12 = scmp.lt.s32.totalorder %s20_s30, %s20_s30 }
  0x1b   :  { %p978_p11 = scmp.ne.s32.totalorder %s20_s30, %s977_s2  ;;  %p983_p13 = scmp.lt.s32.totalorder %s977_s2, %s977_s2 }
  0x1d   :  { %p984_p0 = por %p983_p13, %p982_p12 }
  0x1f   :  { %p985_p1 = pnand %p984_p0, %p978_p11 }
  0x21   :  { %988 = shalt.err (!%p985_p1)
}
  0x22   :  { %22 = dma.hbm_to_vmem [thread:$0]  %s1101_s1, 128, %s20_s30, [#allocation3]  }
  0x23   :  { %s989_s18 = scalar_lea.hbm %s1103_s3, 24576 }
  0x24   :  { %p990_p2 = scmp.ne.s32.totalorder %s1103_s3, %s989_s18  ;;  %p993_p3 = scmp.lt.u32.totalorder %s989_s18, %s1103_s3 }
  0x26   :  { %p995_p4 = pnand %p993_p3, %p990_p2 }
  0x28   :  { %998 = shalt.err (!%p995_p4)
}
  0x29   :  { %s999_s23 = scalar_lea.vmem %s41_s6, 24576  ;;  %p1004_p6 = scmp.lt.s32.totalorder %s41_s6, %s41_s6 }
  0x2a   :  { %p1000_p5 = scmp.ne.s32.totalorder %s41_s6, %s999_s23  ;;  %p1005_p7 = scmp.lt.s32.totalorder %s999_s23, %s999_s23 }
  0x2c   :  { %p1006_p8 = por %p1005_p7, %p1004_p6 }
  0x2e   :  { %p1007_p9 = pnand %p1006_p8, %p1000_p5 }
  0x30   :  { %1010 = shalt.err (!%p1007_p9)
}
  0x31   :  { %s1020_s1 = smov 768   ;;  %s1021_s24 = smov 48  }
  0x32   :  { %46 = dma.hbm_to_vmem [thread:$0]  %s1103_s3, 24576, %s41_s6, [#allocation5], %s1020_s1, %s1020_s1, %s1021_s24  }
  0x33   :  { %1011 = dma.done.wait [#allocation3], 128  }
  0x34   :  { %1012 = vsyncadd [#allocation3], 4294967168 }
  0x35   :  { %1013 = dma.done.wait [#allocation5], 28672  }
  0x36   :  { %1014 = vsyncadd [#allocation5], 4294938624  ;;  %v1022_v0 = vmov 0.0   ;;  %vm1023_vm0 = vmmov 0   ;;  %vm58_vm1 = vcmask 64512   ;;  %v57_v1 = vld [vmem:[#allocation2] sm:$0xff] }
  0x37   :  { %694 = vmatprep.subr.mxu1 %v1022_v0  ;;  %696 = vmatprep.mubr.msk.f32.mxu1 %vm1023_vm0, %v1022_v0  ;;  %v56_v2 = vld [vmem:[%s1100_s0] sm:$0x3]  ;;  %v134_v3 = vld [vmem:[#allocation4 + $0x8] sm:$0xff]  ;;  %v133_v5 = vld [vmem:[#allocation4] sm:$0xff] }
  0x38   :  { %695 = vmatpush3.msra.mxu1 %v57_v1  ;;  %v136_v4 = vld [vmem:[#allocation4 + $0x18] sm:$0xff]  ;;  %v135_v6 = vld [vmem:[#allocation4 + $0x10] sm:$0xff]  ;;  %v138_v9 = vld [vmem:[#allocation4 + $0x28] sm:$0xff] }
  0x39   :  { %697 = vmatmul.mubr.msk.f32.vlgmr.msra.gmra.mrb[0].mxu1 %vm58_vm1, %v56_v2  ;;  %v699_v7 = vpack.c.bf16 %v136_v4, %v134_v3  ;;  %v701_v8 = vpack.c.bf16 %v135_v6, %v133_v5  ;;  %v140_v10 = vld [vmem:[#allocation4 + $0x38] sm:$0xff]  ;;  %v137_v11 = vld [vmem:[#allocation4 + $0x20] sm:$0xff]  ;;  %v139_v13 = vld [vmem:[#allocation4 + $0x30] sm:$0xff] }
  0x3a   :  { %v703_v12 = vpack.c.bf16 %v140_v10, %v138_v9  ;;  %v142_v14 = vld [vmem:[#allocation4 + $0x48] sm:$0xff]  ;;  %v144_v15 = vld [vmem:[#allocation4 + $0x58] sm:$0xff]  ;;  %229 = vmatprep.mubr.f32.mxu1 %v1022_v0  ;;  %v705_v16 = vpack.c.bf16 %v139_v13, %v137_v11  ;;  %v141_v18 = vld [vmem:[#allocation4 + $0x40] sm:$0xff] }
  0x3b   :  { %700 = vmatprep.subr.bf16.mxu1 %v699_v7  ;;  %v707_v17 = vpack.c.bf16 %v144_v15, %v142_v14  ;;  %v143_v19 = vld [vmem:[#allocation4 + $0x50] sm:$0xff]  ;;  %v146_v20 = vld [vmem:[#allocation4 + $0x68] sm:$0xff]  ;;  %v148_v21 = vld [vmem:[#allocation4 + $0x78] sm:$0xff] }
  0x3c   :  { %702 = vmatpush1.bf16.msra.mxu1 %v701_v8  ;;  %v709_v22 = vpack.c.bf16 %v143_v19, %v141_v18  ;;  %v711_v23 = vpack.c.bf16 %v148_v21, %v146_v20  ;;  %v145_v24 = vld [vmem:[#allocation4 + $0x60] sm:$0xff]  ;;  %v147_v25 = vld [vmem:[#allocation4 + $0x70] sm:$0xff]  ;;  %v150_v26 = vld [vmem:[#allocation4 + $0x88] sm:$0xff] }
  0x3d   :  { %704 = vmatprep.subr.bf16.mxu1 %v703_v12  ;;  %v152_v27 = vld [vmem:[#allocation4 + $0x98] sm:$0xff]  ;;  %v713_v28 = vpack.c.bf16 %v147_v25, %v145_v24  ;;  %v149_v30 = vld [vmem:[#allocation4 + $0x80] sm:$0xff]  ;;  %v151_v31 = vld [vmem:[#allocation4 + $0x90] sm:$0xff] }
  0x3e   :  { %v715_v29 = vpack.c.bf16 %v152_v27, %v150_v26  ;;  %v154_v32 = vld [vmem:[#allocation4 + $0xa8] sm:$0xff]  ;;  %v156_v33 = vld [vmem:[#allocation4 + $0xb8] sm:$0xff]  ;;  %v717_v34 = vpack.c.bf16 %v151_v31, %v149_v30  ;;  %v153_v36 = vld [vmem:[#allocation4 + $0xa0] sm:$0xff] }
  0x3f   :  { %v719_v35 = vpack.c.bf16 %v156_v33, %v154_v32  ;;  %v155_v37 = vld [vmem:[#allocation4 + $0xb0] sm:$0xff]  ;;  %v158_v38 = vld [vmem:[#allocation4 + $0xc8] sm:$0xff]  ;;  %v160_v39 = vld [vmem:[#allocation4 + $0xd8] sm:$0xff] }
  0x40   :  { %706 = vmatpush1.bf16.msra.mxu1 %v705_v16  ;;  %v721_v40 = vpack.c.bf16 %v155_v37, %v153_v36  ;;  %v723_v41 = vpack.c.bf16 %v160_v39, %v158_v38  ;;  %v157_v42 = vld [vmem:[#allocation4 + $0xc0] sm:$0xff]  ;;  %v159_v43 = vld [vmem:[#allocation4 + $0xd0] sm:$0xff]  ;;  %v162_v44 = vld [vmem:[#allocation4 + $0xe8] sm:$0xff] }
  0x41   :  { %708 = vmatprep.subr.bf16.mxu1 %v707_v17  ;;  %v164_v45 = vld [vmem:[#allocation4 + $0xf8] sm:$0xff]  ;;  %v725_v46 = vpack.c.bf16 %v159_v43, %v157_v42  ;;  %v161_v48 = vld [vmem:[#allocation4 + $0xe0] sm:$0xff]  ;;  %v163_v49 = vld [vmem:[#allocation4 + $0xf0] sm:$0xff] }
  0x42   :  { %v727_v47 = vpack.c.bf16 %v164_v45, %v162_v44  ;;  %v729_v50 = vpack.c.bf16 %v163_v49, %v161_v48  ;;  %v239_v51 = vld [vmem:[#allocation6 + $0x8] sm:$0xff]  ;;  %v245_v52 = vld [vmem:[#allocation6 + $0x38] sm:$0xff]  ;;  %v238_v53 = vld [vmem:[#allocation6] sm:$0xff] }
  0x43   :  { %v731_v54 = vpack.c.bf16 %v245_v52, %v239_v51  ;;  %v244_v55 = vld [vmem:[#allocation6 + $0x30] sm:$0xff]  ;;  %v241_v56 = vld [vmem:[#allocation6 + $0x18] sm:$0xff]  ;;  %v247_v57 = vld [vmem:[#allocation6 + $0x48] sm:$0xff] }
  0x44   :  { %710 = vmatpush1.bf16.msra.mxu1 %v709_v22  ;;  %v733_v58 = vpack.c.bf16 %v244_v55, %v238_v53  ;;  %v795_v59 = vpack.c.bf16 %v247_v57, %v241_v56  ;;  %v251_v60 = vld [vmem:[#allocation6 + $0x68] sm:$0xff]  ;;  %v257_v61 = vld [vmem:[#allocation6 + $0x98] sm:$0xff]  ;;  %v250_v62 = vld [vmem:[#allocation6 + $0x60] sm:$0xff] }
  0x45   :  { %712 = vmatprep.subr.bf16.mxu1 %v711_v23  ;;  %732 = vmatprep.subr.bf16.mxu0 %v731_v54  ;;  %v256_v63 = vld [vmem:[#allocation6 + $0x90] sm:$0xff]  ;;  %v735_v0 = vpack.c.bf16 %v257_v61, %v251_v60  ;;  %v263_v2 = vld [vmem:[#allocation6 + $0xc8] sm:$0xff]  ;;  %v269_v3 = vld [vmem:[#allocation6 + $0xf8] sm:$0xff] }
  0x46   :  { %734 = vmatpush1.bf16.msra.mxu0 %v733_v58  ;;  %v737_v1 = vpack.c.bf16 %v256_v63, %v250_v62  ;;  %v739_v4 = vpack.c.bf16 %v269_v3, %v263_v2  ;;  %v262_v5 = vld [vmem:[#allocation6 + $0xc0] sm:$0xff]  ;;  %v268_v6 = vld [vmem:[#allocation6 + $0xf0] sm:$0xff]  ;;  %v275_v8 = vld [vmem:[#allocation6 + $0x128] sm:$0xff] }
  0x47   :  { %736 = vmatprep.subr.bf16.mxu0 %v735_v0  ;;  %v741_v7 = vpack.c.bf16 %v268_v6, %v262_v5  ;;  %v281_v9 = vld [vmem:[#allocation6 + $0x158] sm:$0xff]  ;;  %v274_v10 = vld [vmem:[#allocation6 + $0x120] sm:$0xff]  ;;  %v280_v12 = vld [vmem:[#allocation6 + $0x150] sm:$0xff] }
  0x48   :  { %714 = vmatpush1.bf16.msra.mxu1 %v713_v28  ;;  %v743_v11 = vpack.c.bf16 %v281_v9, %v275_v8  ;;  %v745_v13 = vpack.c.bf16 %v280_v12, %v274_v10  ;;  %v287_v14 = vld [vmem:[#allocation6 + $0x188] sm:$0xff]  ;;  %v293_v15 = vld [vmem:[#allocation6 + $0x1b8] sm:$0xff]  ;;  %v286_v16 = vld [vmem:[#allocation6 + $0x180] sm:$0xff] }
  0x49   :  { %716 = vmatprep.subr.bf16.mxu1 %v715_v29  ;;  %v747_v17 = vpack.c.bf16 %v293_v15, %v287_v14  ;;  %v292_v18 = vld [vmem:[#allocation6 + $0x1b0] sm:$0xff]  ;;  %v299_v20 = vld [vmem:[#allocation6 + $0x1e8] sm:$0xff]  ;;  %v305_v21 = vld [vmem:[#allocation6 + $0x218] sm:$0xff] }
  0x4a   :  { %738 = vmatpush1.bf16.msra.mxu0 %v737_v1  ;;  %v749_v19 = vpack.c.bf16 %v292_v18, %v286_v16  ;;  %v298_v22 = vld [vmem:[#allocation6 + $0x1e0] sm:$0xff]  ;;  %v751_v23 = vpack.c.bf16 %v305_v21, %v299_v20  ;;  %v304_v24 = vld [vmem:[#allocation6 + $0x210] sm:$0xff]  ;;  %v311_v26 = vld [vmem:[#allocation6 + $0x248] sm:$0xff] }
  0x4b   :  { %740 = vmatprep.subr.bf16.mxu0 %v739_v4  ;;  %v753_v25 = vpack.c.bf16 %v304_v24, %v298_v22  ;;  %v317_v27 = vld [vmem:[#allocation6 + $0x278] sm:$0xff]  ;;  %v310_v28 = vld [vmem:[#allocation6 + $0x240] sm:$0xff]  ;;  %v316_v30 = vld [vmem:[#allocation6 + $0x270] sm:$0xff] }
  0x4c   :  { %718 = vmatpush1.bf16.msra.mxu1 %v717_v34  ;;  %v755_v29 = vpack.c.bf16 %v317_v27, %v311_v26  ;;  %v757_v31 = vpack.c.bf16 %v316_v30, %v310_v28  ;;  %v323_v32 = vld [vmem:[#allocation6 + $0x2a8] sm:$0xff]  ;;  %v329_v33 = vld [vmem:[#allocation6 + $0x2d8] sm:$0xff]  ;;  %v322_v34 = vld [vmem:[#allocation6 + $0x2a0] sm:$0xff] }
  0x4d   :  { %720 = vmatprep.subr.bf16.mxu1 %v719_v35  ;;  %v759_v35 = vpack.c.bf16 %v329_v33, %v323_v32  ;;  %v328_v36 = vld [vmem:[#allocation6 + $0x2d0] sm:$0xff]  ;;  %v335_v38 = vld [vmem:[#allocation6 + $0x308] sm:$0xff]  ;;  %v341_v39 = vld [vmem:[#allocation6 + $0x338] sm:$0xff] }
  0x4e   :  { %742 = vmatpush1.bf16.msra.mxu0 %v741_v7  ;;  %v761_v37 = vpack.c.bf16 %v328_v36, %v322_v34  ;;  %v340_v42 = vld [vmem:[#allocation6 + $0x330] sm:$0xff]  ;;  %v347_v44 = vld [vmem:[#allocation6 + $0x368] sm:$0xff]  ;;  %v353_v45 = vld [vmem:[#allocation6 + $0x398] sm:$0xff] }
  0x4f   :  { %744 = vmatprep.subr.bf16.mxu0 %v743_v11  ;;  %v352_v48 = vld [vmem:[#allocation6 + $0x390] sm:$0xff]  ;;  %v365_v51 = vld [vmem:[#allocation6 + $0x3f8] sm:$0xff]  ;;  %v358_v52 = vld [vmem:[#allocation6 + $0x3c0] sm:$0xff] }
  0x50   :  { %722 = vmatpush1.bf16.msra.mxu1 %v721_v40  ;;  %v334_v40 = vld [vmem:[#allocation6 + $0x300] sm:$0xff]  ;;  %v364_v54 = vld [vmem:[#allocation6 + $0x3f0] sm:$0xff]  ;;  %v371_v56 = vld [vmem:[#allocation6 + $0x428] sm:$0xff] }
  0x51   :  { %724 = vmatprep.subr.bf16.mxu1 %v723_v41  ;;  %v763_v41 = vpack.c.bf16 %v341_v39, %v335_v38  ;;  %v765_v43 = vpack.c.bf16 %v340_v42, %v334_v40  ;;  %v773_v55 = vpack.c.bf16 %v364_v54, %v358_v52  ;;  %v377_v57 = vld [vmem:[#allocation6 + $0x458] sm:$0xff]  ;;  %v370_v58 = vld [vmem:[#allocation6 + $0x420] sm:$0xff]  ;;  %v376_v60 = vld [vmem:[#allocation6 + $0x450] sm:$0xff] }
  0x52   :  { %746 = vmatpush1.bf16.msra.mxu0 %v745_v13  ;;  %v777_v61 = vpack.c.bf16 %v376_v60, %v370_v58  ;;  %v383_v62 = vld [vmem:[#allocation6 + $0x488] sm:$0xff]  ;;  %v389_v63 = vld [vmem:[#allocation6 + $0x4b8] sm:$0xff]  ;;  %v382_v0 = vld [vmem:[#allocation6 + $0x480] sm:$0xff] }
  0x53   :  { %748 = vmatprep.subr.bf16.mxu0 %v747_v17  ;;  %v779_v1 = vpack.c.bf16 %v389_v63, %v383_v62  ;;  %v388_v2 = vld [vmem:[#allocation6 + $0x4b0] sm:$0xff]  ;;  %v395_v4 = vld [vmem:[#allocation6 + $0x4e8] sm:$0xff]  ;;  %v401_v5 = vld [vmem:[#allocation6 + $0x518] sm:$0xff] }
  0x54   :  { %726 = vmatpush1.bf16.msra.mxu1 %v725_v46  ;;  %v346_v46 = vld [vmem:[#allocation6 + $0x360] sm:$0xff]  ;;  %v781_v3 = vpack.c.bf16 %v388_v2, %v382_v0  ;;  %v783_v7 = vpack.c.bf16 %v401_v5, %v395_v4  ;;  %v400_v8 = vld [vmem:[#allocation6 + $0x510] sm:$0xff]  ;;  %v407_v10 = vld [vmem:[#allocation6 + $0x548] sm:$0xff] }
  0x55   :  { %728 = vmatprep.subr.bf16.mxu1 %v727_v47  ;;  %v767_v47 = vpack.c.bf16 %v353_v45, %v347_v44  ;;  %v769_v49 = vpack.c.bf16 %v352_v48, %v346_v46  ;;  %v394_v6 = vld [vmem:[#allocation6 + $0x4e0] sm:$0xff]  ;;  %v413_v11 = vld [vmem:[#allocation6 + $0x578] sm:$0xff]  ;;  %v412_v14 = vld [vmem:[#allocation6 + $0x570] sm:$0xff] }
  0x56   :  { %750 = vmatpush1.bf16.msra.mxu0 %v749_v19  ;;  %v785_v9 = vpack.c.bf16 %v400_v8, %v394_v6  ;;  %v406_v12 = vld [vmem:[#allocation6 + $0x540] sm:$0xff]  ;;  %v787_v13 = vpack.c.bf16 %v413_v11, %v407_v10  ;;  %v240_v16 = vld [vmem:[#allocation6 + $0x10] sm:$0xff]  ;;  %v253_v18 = vld [vmem:[#allocation6 + $0x78] sm:$0xff] }
  0x57   :  { %752 = vmatprep.subr.bf16.mxu0 %v751_v23  ;;  %v789_v15 = vpack.c.bf16 %v412_v14, %v406_v12  ;;  %v246_v17 = vld [vmem:[#allocation6 + $0x40] sm:$0xff]  ;;  %v259_v19 = vld [vmem:[#allocation6 + $0xa8] sm:$0xff]  ;;  %v265_v27 = vld [vmem:[#allocation6 + $0xd8] sm:$0xff] }
  0x58   :  { %730 = vmatpush1.bf16.msra.mxu1 %v729_v50  ;;  %v359_v50 = vld [vmem:[#allocation6 + $0x3c8] sm:$0xff]  ;;  %v797_v21 = vpack.c.bf16 %v246_v17, %v240_v16  ;;  %v799_v24 = vpack.c.bf16 %v259_v19, %v253_v18  ;;  %v258_v26 = vld [vmem:[#allocation6 + $0xa0] sm:$0xff]  ;;  %v277_v33 = vld [vmem:[#allocation6 + $0x138] sm:$0xff] }
  0x59   :  { %796 = vmatprep.subr.bf16.mxu1 %v795_v59  ;;  %v771_v53 = vpack.c.bf16 %v365_v51, %v359_v50  ;;  %v775_v59 = vpack.c.bf16 %v377_v57, %v371_v56  ;;  %v271_v28 = vld [vmem:[#allocation6 + $0x108] sm:$0xff]  ;;  %v270_v32 = vld [vmem:[#allocation6 + $0x100] sm:$0xff]  ;;  %v289_v39 = vld [vmem:[#allocation6 + $0x198] sm:$0xff] }
  0x5a   :  { %754 = vmatpush1.bf16.msra.mxu0 %v753_v25  ;;  %v252_v25 = vld [vmem:[#allocation6 + $0x70] sm:$0xff]  ;;  %v803_v30 = vpack.c.bf16 %v271_v28, %v265_v27  ;;  %v283_v34 = vld [vmem:[#allocation6 + $0x168] sm:$0xff]  ;;  %v282_v38 = vld [vmem:[#allocation6 + $0x160] sm:$0xff] }
  0x5b   :  { %756 = vmatprep.subr.bf16.mxu0 %v755_v29  ;;  %v801_v29 = vpack.c.bf16 %v258_v26, %v252_v25  ;;  %v807_v36 = vpack.c.bf16 %v283_v34, %v277_v33  ;;  %v295_v40 = vld [vmem:[#allocation6 + $0x1c8] sm:$0xff]  ;;  %v294_v44 = vld [vmem:[#allocation6 + $0x1c0] sm:$0xff]  ;;  %v301_v45 = vld [vmem:[#allocation6 + $0x1f8] sm:$0xff] }
  0x5c   :  { %v811_v42 = vpack.c.bf16 %v295_v40, %v289_v39  ;;  %v307_v46 = vld [vmem:[#allocation6 + $0x228] sm:$0xff]  ;;  %v306_v50 = vld [vmem:[#allocation6 + $0x220] sm:$0xff]  ;;  %v313_v51 = vld [vmem:[#allocation6 + $0x258] sm:$0xff] }
  0x5d   :  { %v815_v48 = vpack.c.bf16 %v307_v46, %v301_v45  ;;  %v319_v52 = vld [vmem:[#allocation6 + $0x288] sm:$0xff]  ;;  %v318_v56 = vld [vmem:[#allocation6 + $0x280] sm:$0xff]  ;;  %v325_v57 = vld [vmem:[#allocation6 + $0x2b8] sm:$0xff] }
  0x5e   :  { %758 = vmatpush1.bf16.msra.mxu0 %v757_v31  ;;  %v264_v31 = vld [vmem:[#allocation6 + $0xd0] sm:$0xff]  ;;  %v819_v54 = vpack.c.bf16 %v319_v52, %v313_v51  ;;  %v331_v58 = vld [vmem:[#allocation6 + $0x2e8] sm:$0xff]  ;;  %v330_v62 = vld [vmem:[#allocation6 + $0x2e0] sm:$0xff] }
  0x5f   :  { %760 = vmatprep.subr.bf16.mxu0 %v759_v35  ;;  %v805_v35 = vpack.c.bf16 %v270_v32, %v264_v31  ;;  %v823_v60 = vpack.c.bf16 %v331_v58, %v325_v57  ;;  %v337_v63 = vld [vmem:[#allocation6 + $0x318] sm:$0xff]  ;;  %v343_v0 = vld [vmem:[#allocation6 + $0x348] sm:$0xff]  ;;  %v342_v4 = vld [vmem:[#allocation6 + $0x340] sm:$0xff] }
  0x60   :  { %v827_v2 = vpack.c.bf16 %v343_v0, %v337_v63  ;;  %v349_v5 = vld [vmem:[#allocation6 + $0x378] sm:$0xff]  ;;  %v355_v6 = vld [vmem:[#allocation6 + $0x3a8] sm:$0xff]  ;;  %v354_v10 = vld [vmem:[#allocation6 + $0x3a0] sm:$0xff] }
  0x61   :  { %v831_v8 = vpack.c.bf16 %v355_v6, %v349_v5  ;;  %v361_v11 = vld [vmem:[#allocation6 + $0x3d8] sm:$0xff]  ;;  %v367_v12 = vld [vmem:[#allocation6 + $0x408] sm:$0xff]  ;;  %v366_v16 = vld [vmem:[#allocation6 + $0x400] sm:$0xff] }
  0x62   :  { %762 = vmatpush1.bf16.msra.mxu0 %v761_v37  ;;  %v276_v37 = vld [vmem:[#allocation6 + $0x130] sm:$0xff]  ;;  %v835_v14 = vpack.c.bf16 %v367_v12, %v361_v11  ;;  %v373_v17 = vld [vmem:[#allocation6 + $0x438] sm:$0xff]  ;;  %v379_v18 = vld [vmem:[#allocation6 + $0x468] sm:$0xff] }
  0x63   :  { %764 = vmatprep.subr.bf16.mxu0 %v763_v41  ;;  %v809_v41 = vpack.c.bf16 %v282_v38, %v276_v37  ;;  %v384_v27 = vld [vmem:[#allocation6 + $0x490] sm:$0xff]  ;;  %v390_v28 = vld [vmem:[#allocation6 + $0x4c0] sm:$0xff]  ;;  %v267_v5 = vld [vmem:[#allocation6 + $0xe8] sm:$0xff] }
  0x64   :  { %v845_v31 = vpack.c.bf16 %v390_v28, %v384_v27  ;;  %v396_v33 = vld [vmem:[#allocation6 + $0x4f0] sm:$0xff]  ;;  %v402_v34 = vld [vmem:[#allocation6 + $0x520] sm:$0xff]  ;;  %v273_v6 = vld [vmem:[#allocation6 + $0x118] sm:$0xff] }
  0x65   :  { %v849_v37 = vpack.c.bf16 %v402_v34, %v396_v33  ;;  %v408_v39 = vld [vmem:[#allocation6 + $0x550] sm:$0xff]  ;;  %v414_v40 = vld [vmem:[#allocation6 + $0x580] sm:$0xff]  ;;  %v279_v11 = vld [vmem:[#allocation6 + $0x148] sm:$0xff] }
  0x66   :  { %766 = vmatpush1.bf16.msra.mxu0 %v765_v43  ;;  %v288_v43 = vld [vmem:[#allocation6 + $0x190] sm:$0xff]  ;;  %v418_v45 = vld [vmem:[#allocation6 + $0x5a0] sm:$0xff]  ;;  %v285_v12 = vld [vmem:[#allocation6 + $0x178] sm:$0xff] }
  0x67   :  { %768 = vmatprep.subr.bf16.mxu0 %v767_v47  ;;  %v813_v47 = vpack.c.bf16 %v294_v44, %v288_v43  ;;  %v425_v43 = vld [vmem:[#allocation6 + $0x5d8] sm:$0xff]  ;;  %v424_v46 = vld [vmem:[#allocation6 + $0x5d0] sm:$0xff]  ;;  %v426_v51 = vld [vmem:[#allocation6 + $0x5e0] sm:$0xff] }
  0x68   :  { %v242_v57 = vld [vmem:[#allocation6 + $0x20] sm:$0xff]  ;;  %v248_v58 = vld [vmem:[#allocation6 + $0x50] sm:$0xff] }
  0x69   :  { %v861_v0 = vpack.c.bf16 %v248_v58, %v242_v57  ;;  %v302_v27 = vld [vmem:[#allocation6 + $0x200] sm:$0xff]  ;;  %v308_v28 = vld [vmem:[#allocation6 + $0x230] sm:$0xff] }
  0x6a   :  { %770 = vmatpush1.bf16.msra.mxu0 %v769_v49  ;;  %v300_v49 = vld [vmem:[#allocation6 + $0x1f0] sm:$0xff]  ;;  %v314_v33 = vld [vmem:[#allocation6 + $0x260] sm:$0xff] }
  0x6b   :  { %772 = vmatprep.subr.bf16.mxu0 %v771_v53  ;;  %v817_v53 = vpack.c.bf16 %v306_v50, %v300_v49  ;;  %v427_v49 = vld [vmem:[#allocation6 + $0x5e8] sm:$0xff]  ;;  %v420_v50 = vld [vmem:[#allocation6 + $0x5b0] sm:$0xff]  ;;  %v362_v57 = vld [vmem:[#allocation6 + $0x3e0] sm:$0xff] }
  0x6c   :  { %v320_v34 = vld [vmem:[#allocation6 + $0x290] sm:$0xff] }
  0x6d   :  { %v368_v58 = vld [vmem:[#allocation6 + $0x410] sm:$0xff] }
  0x6e   :  { %774 = vmatpush1.bf16.msra.mxu0 %v773_v55  ;;  %v312_v55 = vld [vmem:[#allocation6 + $0x250] sm:$0xff] }
  0x6f   :  { %776 = vmatprep.subr.bf16.mxu0 %v775_v59  ;;  %v821_v59 = vpack.c.bf16 %v318_v56, %v312_v55  ;;  %v249_v55 = vld [vmem:[#allocation6 + $0x58] sm:$0xff] }
  0x72   :  { %778 = vmatpush1.bf16.msra.mxu0 %v777_v61  ;;  %v324_v61 = vld [vmem:[#allocation6 + $0x2b0] sm:$0xff] }
  0x73   :  { %780 = vmatprep.subr.bf16.mxu0 %v779_v1  ;;  %v825_v1 = vpack.c.bf16 %v330_v62, %v324_v61  ;;  %v261_v61 = vld [vmem:[#allocation6 + $0xb8] sm:$0xff] }
  0x76   :  { %782 = vmatpush1.bf16.msra.mxu0 %v781_v3  ;;  %v336_v3 = vld [vmem:[#allocation6 + $0x310] sm:$0xff] }
  0x77   :  { %784 = vmatprep.subr.bf16.mxu0 %v783_v7  ;;  %v829_v7 = vpack.c.bf16 %v342_v4, %v336_v3  ;;  %v254_v3 = vld [vmem:[#allocation6 + $0x80] sm:$0xff]  ;;  %v260_v4 = vld [vmem:[#allocation6 + $0xb0] sm:$0xff] }
  0x7a   :  { %786 = vmatpush1.bf16.msra.mxu0 %v785_v9  ;;  %v348_v9 = vld [vmem:[#allocation6 + $0x370] sm:$0xff] }
  0x7b   :  { %788 = vmatprep.subr.bf16.mxu0 %v787_v13  ;;  %v833_v13 = vpack.c.bf16 %v354_v10, %v348_v9  ;;  %v266_v9 = vld [vmem:[#allocation6 + $0xe0] sm:$0xff]  ;;  %v272_v10 = vld [vmem:[#allocation6 + $0x110] sm:$0xff] }
  0x7e   :  { %790 = vmatpush1.bf16.msra.mxu0 %v789_v15  ;;  %v360_v15 = vld [vmem:[#allocation6 + $0x3d0] sm:$0xff] }
  0x7f   :  { %v837_v19 = vpack.c.bf16 %v366_v16, %v360_v15  ;;  %v278_v15 = vld [vmem:[#allocation6 + $0x140] sm:$0xff]  ;;  %v284_v16 = vld [vmem:[#allocation6 + $0x170] sm:$0xff] }
 0x10c   :  { %v128_v20 = vpop.f32.mrb[0].mxu1 }
 0x10d   :  { %v132_v22 = vmax.f32 %v128_v20, 0.0  ;;  %v698_v23 = vpop.f32.mrb[1].mxu1  ;;  %v839_v20 = vpack.c.bf16 %v379_v18, %v373_v17  ;;  %v291_v17 = vld [vmem:[#allocation6 + $0x1a8] sm:$0xff]  ;;  %v297_v18 = vld [vmem:[#allocation6 + $0x1d8] sm:$0xff] }
 0x10e   :  { %v385_v23 = vld [vmem:[#allocation6 + $0x498] sm:$0xff] }
 0x10f   :  { %230 = vmatmul.mubr.f32.vlgmr.msra.gmra.mrb[2].mxu1 %v132_v22  ;;  %v378_v22 = vld [vmem:[#allocation6 + $0x460] sm:$0xff] }
 0x110   :  { %798 = vmatpush1.bf16.msra.mxu1 %v797_v21  ;;  %v372_v21 = vld [vmem:[#allocation6 + $0x430] sm:$0xff] }
 0x111   :  { %800 = vmatprep.subr.bf16.mxu1 %v799_v24  ;;  %v391_v24 = vld [vmem:[#allocation6 + $0x4c8] sm:$0xff]  ;;  %v841_v25 = vpack.c.bf16 %v378_v22, %v372_v21  ;;  %v290_v21 = vld [vmem:[#allocation6 + $0x1a0] sm:$0xff]  ;;  %v296_v22 = vld [vmem:[#allocation6 + $0x1d0] sm:$0xff] }
 0x112   :  { %v843_v26 = vpack.c.bf16 %v391_v24, %v385_v23  ;;  %v303_v23 = vld [vmem:[#allocation6 + $0x208] sm:$0xff]  ;;  %v309_v24 = vld [vmem:[#allocation6 + $0x238] sm:$0xff] }
 0x114   :  { %802 = vmatpush1.bf16.msra.mxu1 %v801_v29  ;;  %v397_v29 = vld [vmem:[#allocation6 + $0x4f8] sm:$0xff] }
 0x115   :  { %804 = vmatprep.subr.bf16.mxu1 %v803_v30  ;;  %v403_v30 = vld [vmem:[#allocation6 + $0x528] sm:$0xff] }
 0x116   :  { %v847_v32 = vpack.c.bf16 %v403_v30, %v397_v29  ;;  %v315_v29 = vld [vmem:[#allocation6 + $0x268] sm:$0xff]  ;;  %v321_v30 = vld [vmem:[#allocation6 + $0x298] sm:$0xff] }
 0x118   :  { %806 = vmatpush1.bf16.msra.mxu1 %v805_v35  ;;  %v409_v35 = vld [vmem:[#allocation6 + $0x558] sm:$0xff] }
 0x119   :  { %808 = vmatprep.subr.bf16.mxu1 %v807_v36  ;;  %v415_v36 = vld [vmem:[#allocation6 + $0x588] sm:$0xff] }
 0x11a   :  { %v851_v38 = vpack.c.bf16 %v415_v36, %v409_v35  ;;  %v327_v35 = vld [vmem:[#allocation6 + $0x2c8] sm:$0xff]  ;;  %v333_v36 = vld [vmem:[#allocation6 + $0x2f8] sm:$0xff] }
 0x11c   :  { %810 = vmatpush1.bf16.msra.mxu1 %v809_v41  ;;  %v853_v41 = vpack.c.bf16 %v414_v40, %v408_v39  ;;  %v326_v39 = vld [vmem:[#allocation6 + $0x2c0] sm:$0xff]  ;;  %v332_v40 = vld [vmem:[#allocation6 + $0x2f0] sm:$0xff] }
 0x11d   :  { %812 = vmatprep.subr.bf16.mxu1 %v811_v42  ;;  %v419_v42 = vld [vmem:[#allocation6 + $0x5a8] sm:$0xff] }
 0x11e   :  { %v791_v44 = vpack.c.bf16 %v425_v43, %v419_v42  ;;  %v345_v42 = vld [vmem:[#allocation6 + $0x358] sm:$0xff]  ;;  %v889_v43 = vpack.c.bf16 %v332_v40, %v326_v39 }
 0x120   :  { %814 = vmatpush1.bf16.msra.mxu1 %v813_v47  ;;  %v421_v47 = vld [vmem:[#allocation6 + $0x5b8] sm:$0xff]  ;;  %792 = vmatprep.subr.bf16.mxu0 %v791_v44 }
 0x121   :  { %816 = vmatprep.subr.bf16.mxu1 %v815_v48  ;;  %v793_v48 = vpack.c.bf16 %v424_v46, %v418_v45  ;;  %v855_v52 = vpack.c.bf16 %v427_v49, %v421_v47  ;;  %v338_v45 = vld [vmem:[#allocation6 + $0x320] sm:$0xff]  ;;  %v344_v46 = vld [vmem:[#allocation6 + $0x350] sm:$0xff]  ;;  %v351_v47 = vld [vmem:[#allocation6 + $0x388] sm:$0xff] }
 0x122   :  { %v893_v49 = vpack.c.bf16 %v344_v46, %v338_v45 }
 0x123   :  { %794 = vmatpush1.bf16.msra.mxu0 %v793_v48  ;;  %v357_v48 = vld [vmem:[#allocation6 + $0x3b8] sm:$0xff] }
 0x124   :  { %818 = vmatpush1.bf16.msra.mxu1 %v817_v53  ;;  %v857_v53 = vpack.c.bf16 %v426_v51, %v420_v50  ;;  %v895_v50 = vpack.c.bf16 %v357_v48, %v351_v47  ;;  %v350_v51 = vld [vmem:[#allocation6 + $0x380] sm:$0xff] }
 0x125   :  { %820 = vmatprep.subr.bf16.mxu1 %v819_v54  ;;  %v243_v54 = vld [vmem:[#allocation6 + $0x28] sm:$0xff] }
 0x126   :  { %v859_v56 = vpack.c.bf16 %v249_v55, %v243_v54  ;;  %v369_v54 = vld [vmem:[#allocation6 + $0x418] sm:$0xff] }
 0x128   :  { %822 = vmatpush1.bf16.msra.mxu1 %v821_v59  ;;  %860 = vmatprep.subr.bf16.mxu0 %v859_v56 }
 0x129   :  { %824 = vmatprep.subr.bf16.mxu1 %v823_v60  ;;  %v255_v60 = vld [vmem:[#allocation6 + $0x88] sm:$0xff] }
 0x12c   :  { %826 = vmatpush1.bf16.msra.mxu1 %v825_v1 }
 0x12d   :  { %828 = vmatprep.subr.bf16.mxu1 %v827_v2  ;;  %v863_v2 = vpack.c.bf16 %v261_v61, %v255_v60  ;;  %v381_v60 = vld [vmem:[#allocation6 + $0x478] sm:$0xff]  ;;  %v901_v61 = vpack.c.bf16 %v368_v58, %v362_v57 }
 0x130   :  { %830 = vmatpush1.bf16.msra.mxu1 %v829_v7  ;;  %v865_v7 = vpack.c.bf16 %v260_v4, %v254_v3  ;;  %v393_v3 = vld [vmem:[#allocation6 + $0x4d8] sm:$0xff] }
 0x131   :  { %832 = vmatprep.subr.bf16.mxu1 %v831_v8  ;;  %v867_v8 = vpack.c.bf16 %v273_v6, %v267_v5  ;;  %v386_v6 = vld [vmem:[#allocation6 + $0x4a0] sm:$0xff] }
 0x134   :  { %834 = vmatpush1.bf16.msra.mxu1 %v833_v13  ;;  %v869_v13 = vpack.c.bf16 %v272_v10, %v266_v9  ;;  %v405_v9 = vld [vmem:[#allocation6 + $0x538] sm:$0xff] }
 0x135   :  { %836 = vmatprep.subr.bf16.mxu1 %v835_v14  ;;  %v871_v14 = vpack.c.bf16 %v285_v12, %v279_v11  ;;  %v398_v12 = vld [vmem:[#allocation6 + $0x500] sm:$0xff] }
 0x138   :  { %838 = vmatpush1.bf16.msra.mxu1 %v837_v19  ;;  %v873_v19 = vpack.c.bf16 %v284_v16, %v278_v15  ;;  %v417_v15 = vld [vmem:[#allocation6 + $0x598] sm:$0xff] }
 0x139   :  { %840 = vmatprep.subr.bf16.mxu1 %v839_v20  ;;  %v875_v20 = vpack.c.bf16 %v297_v18, %v291_v17  ;;  %v410_v18 = vld [vmem:[#allocation6 + $0x560] sm:$0xff] }
 0x13c   :  { %842 = vmatpush1.bf16.msra.mxu1 %v841_v25  ;;  %v877_v25 = vpack.c.bf16 %v296_v22, %v290_v21  ;;  %v429_v21 = vld [vmem:[#allocation6 + $0x5f8] sm:$0xff] }
 0x13d   :  { %844 = vmatprep.subr.bf16.mxu1 %v843_v26  ;;  %v879_v26 = vpack.c.bf16 %v309_v24, %v303_v23  ;;  %v422_v24 = vld [vmem:[#allocation6 + $0x5c0] sm:$0xff] }
 0x140   :  { %846 = vmatpush1.bf16.msra.mxu1 %v845_v31  ;;  %v881_v31 = vpack.c.bf16 %v308_v28, %v302_v27 }
 0x141   :  { %848 = vmatprep.subr.bf16.mxu1 %v847_v32  ;;  %v883_v32 = vpack.c.bf16 %v321_v30, %v315_v29 }
 0x144   :  { %850 = vmatpush1.bf16.msra.mxu1 %v849_v37  ;;  %v885_v37 = vpack.c.bf16 %v320_v34, %v314_v33  ;;  %v660_v33 = vlaneseq }
 0x145   :  { %852 = vmatprep.subr.bf16.mxu1 %v851_v38  ;;  %v887_v38 = vpack.c.bf16 %v333_v36, %v327_v35 }
 0x146   :  { %v661_v35 = vshrl.u32 %v660_v33, 7 }
 0x148   :  { %854 = vmatpush1.bf16.msra.mxu1 %v853_v41  ;;  %v339_v41 = vld [vmem:[#allocation6 + $0x328] sm:$0xff] }
 0x149   :  { %856 = vmatprep.subr.bf16.mxu1 %v855_v52  ;;  %v891_v44 = vpack.c.bf16 %v345_v42, %v339_v41  ;;  %v356_v52 = vld [vmem:[#allocation6 + $0x3b0] sm:$0xff] }
 0x14a   :  { %v897_v55 = vpack.c.bf16 %v356_v52, %v350_v51 }
 0x14c   :  { %858 = vmatpush1.bf16.msra.mxu1 %v857_v53  ;;  %v363_v53 = vld [vmem:[#allocation6 + $0x3e8] sm:$0xff] }
 0x14d   :  { %v899_v56 = vpack.c.bf16 %v369_v54, %v363_v53 }
 0x1e2   :  { %v231_v59 = vpop.f32.mrb[2].mxu1 }
 0x1e3   :  { %v233_v62 = vpop.f32.mrb[3].mxu1  ;;  %v1089_v1 = vmax.f32 %v231_v59, 0.0  ;;  %v375_v59 = vld [vmem:[#allocation6 + $0x448] sm:$0xff] }
 0x1e4   :  { %v237_v63 = vmax.f32 %v233_v62, 0.0  ;;  %v903_v62 = vpack.c.bf16 %v381_v60, %v375_v59 }
 0x1e6   :  { %494 = vmatprep.mubr.f32.mxu0 %v237_v63  ;;  %565 = vmatprep.mubr.f32.mxu1 %v237_v63 }
 0x1e7   :  { %495 = vmatmul.mubr.f32.vlgmr.msra.gmra.mrb[0].mxu0 %v1089_v1  ;;  %566 = vmatmul.mubr.f32.vlgmr.msra.gmra.mrb[4].mxu1 %v1089_v1 }
 0x1e8   :  { %862 = vmatpush1.bf16.msra.mxu0 %v861_v0  ;;  %636 = vmatprep.mubr.f32.mxu0 %v237_v63  ;;  %v374_v63 = vld [vmem:[#allocation6 + $0x440] sm:$0xff]  ;;  %v380_v0 = vld [vmem:[#allocation6 + $0x470] sm:$0xff] }
 0x1e9   :  { %864 = vmatprep.subr.bf16.mxu0 %v863_v2  ;;  %v387_v2 = vld [vmem:[#allocation6 + $0x4a8] sm:$0xff]  ;;  %v905_v4 = vpack.c.bf16 %v380_v0, %v374_v63 }
 0x1ea   :  { %v907_v5 = vpack.c.bf16 %v393_v3, %v387_v2 }
 0x1ec   :  { %866 = vmatpush1.bf16.msra.mxu0 %v865_v7  ;;  %v392_v7 = vld [vmem:[#allocation6 + $0x4d0] sm:$0xff] }
 0x1ed   :  { %868 = vmatprep.subr.bf16.mxu0 %v867_v8  ;;  %v399_v8 = vld [vmem:[#allocation6 + $0x508] sm:$0xff]  ;;  %v909_v10 = vpack.c.bf16 %v392_v7, %v386_v6 }
 0x1ee   :  { %v911_v11 = vpack.c.bf16 %v405_v9, %v399_v8 }
 0x1f0   :  { %870 = vmatpush1.bf16.msra.mxu0 %v869_v13  ;;  %v404_v13 = vld [vmem:[#allocation6 + $0x530] sm:$0xff] }
 0x1f1   :  { %872 = vmatprep.subr.bf16.mxu0 %v871_v14  ;;  %v411_v14 = vld [vmem:[#allocation6 + $0x568] sm:$0xff]  ;;  %v913_v16 = vpack.c.bf16 %v404_v13, %v398_v12 }
 0x1f2   :  { %v915_v17 = vpack.c.bf16 %v417_v15, %v411_v14 }
 0x1f4   :  { %874 = vmatpush1.bf16.msra.mxu0 %v873_v19  ;;  %v416_v19 = vld [vmem:[#allocation6 + $0x590] sm:$0xff] }
 0x1f5   :  { %876 = vmatprep.subr.bf16.mxu0 %v875_v20  ;;  %v423_v20 = vld [vmem:[#allocation6 + $0x5c8] sm:$0xff]  ;;  %v917_v22 = vpack.c.bf16 %v416_v19, %v410_v18 }
 0x1f6   :  { %v919_v23 = vpack.c.bf16 %v429_v21, %v423_v20 }
 0x1f8   :  { %878 = vmatpush1.bf16.msra.mxu0 %v877_v25  ;;  %v428_v25 = vld [vmem:[#allocation6 + $0x5f0] sm:$0xff] }
 0x1f9   :  { %880 = vmatprep.subr.bf16.mxu0 %v879_v26  ;;  %v921_v26 = vpack.c.bf16 %v428_v25, %v422_v24 }
 0x1fc   :  { %882 = vmatpush1.bf16.msra.mxu0 %v881_v31  ;;  %v1024_v31 = vmov 1983009808  }
 0x1fd   :  { %884 = vmatprep.subr.bf16.mxu0 %v883_v32  ;;  %v658_v32 = vunpack.c.l.s4 %v1024_v31 }
 0x1ff   :  { %v659_v34 = vunpack.c.0.s8 %v658_v32 }
 0x200   :  { %886 = vmatpush1.bf16.msra.mxu0 %v885_v37 }
 0x201   :  { %888 = vmatprep.subr.bf16.mxu0 %v887_v38  ;;  %v662_v38 = vsub.s32 %v659_v34, %v661_v35 }
 0x204   :  { %890 = vmatpush1.bf16.msra.mxu0 %v889_v43 }
 0x205   :  { %892 = vmatprep.subr.bf16.mxu0 %v891_v44 }
 0x208   :  { %894 = vmatpush1.bf16.msra.mxu0 %v893_v49 }
 0x209   :  { %896 = vmatprep.subr.bf16.mxu0 %v895_v50 }
 0x20c   :  { %898 = vmatpush1.bf16.msra.mxu0 %v897_v55 }
 0x20d   :  { %900 = vmatprep.subr.bf16.mxu0 %v899_v56 }
 0x210   :  { %902 = vmatpush1.bf16.msra.mxu0 %v901_v61 }
 0x211   :  { %904 = vmatprep.subr.bf16.mxu0 %v903_v62 }
 0x214   :  { %906 = vmatpush1.bf16.msra.mxu0 %v905_v4 }
 0x215   :  { %908 = vmatprep.subr.bf16.mxu0 %v907_v5 }
 0x218   :  { %910 = vmatpush1.bf16.msra.mxu0 %v909_v10 }
 0x219   :  { %912 = vmatprep.subr.bf16.mxu0 %v911_v11 }
 0x21c   :  { %914 = vmatpush1.bf16.msra.mxu0 %v913_v16 }
 0x21d   :  { %916 = vmatprep.subr.bf16.mxu0 %v915_v17 }
 0x220   :  { %918 = vmatpush1.bf16.msra.mxu0 %v917_v22 }
 0x221   :  { %920 = vmatprep.subr.bf16.mxu0 %v919_v23 }
 0x224   :  { %922 = vmatpush1.bf16.msra.mxu0 %v921_v26 }
 0x227   :  { %637 = vmatmul.mubr.f32.vlgmr.msra.gmra.mrb[2].mxu0 %v1089_v1 }
 0x2ba   :  { %v496_v27 = vpop.f32.mrb[0].mxu0  ;;  %v567_v28 = vpop.f32.mrb[4].mxu1 }
 0x2bb   :  { %933 = vtanh.f32 %v496_v27  ;;  %v498_v29 = vpop.f32.mrb[1].mxu0  ;;  %v569_v30 = vpop.f32.mrb[5].mxu1 }
 0x2bc   :  { %935 = vtanh.f32 %v567_v28 }
 0x2bd   :  { %937 = vtanh.f32 %v498_v29 }
 0x2be   :  { %939 = vtanh.f32 %v569_v30 }
 0x2c5   :  { %v934_v36 = vpop.eup %933 }
 0x2c6   :  { %v936_v37 = vpop.eup %935 }
 0x2c7   :  { %v938_v39 = vpop.eup %937 }
 0x2c8   :  { %v940_v40 = vpop.eup %939  ;;  %v655_v41 = vcombine.low %v934_v36, %v938_v39 }
 0x2c9   :  { %v656_v1 = vcombine.low %v936_v37, %v940_v40 }
 0x2ca   :  { %v663_v42 = vrot.slane %v655_v41, %v662_v38 }
 0x2cb   :  { %v670_v43 = vrot.slane %v656_v1, %v662_v38 }
 0x2cd   :  { %v671_v44 = vcombine.low %v663_v42, %v670_v43 }
 0x2cf   :  { %682 = vst [vmem:[%s1104_s4] sm:$0xff] %v671_v44 }
 0x2fa   :  { %v638_v45 = vpop.f32.mrb[2].mxu0 }
 0x2fb   :  { %941 = vtanh.f32 %v638_v45  ;;  %v640_v46 = vpop.f32.mrb[3].mxu0 }
 0x2fc   :  { %943 = vtanh.f32 %v640_v46 }
 0x305   :  { %v942_v47 = vpop.eup %941 }
 0x306   :  { %v944_v48 = vpop.eup %943 }
 0x307   :  { %v672_v49 = vcombine.low %v942_v47, %v944_v48 }
 0x309   :  { %691 = vst.sshfl [vmem:[%s1104_s4 + $0x8] sm:$0x33 pattern:$0x76325410] %v672_v49 }
 0x30a   :  { %688 = vsyncpa [#allocation3], 1 }
 0x30b   :  { %689 = vsyncpa [#allocation5], 1 }

</bundles_post_ra>
